<compile_context>
chip_gen: v5e
topology: v5e:2x2
jax: 0.10.0
libtpu: 0.0.40
codegen_flags: <defaults>
</compile_context>

<pallas_src>
import functools

import jax
import jax.numpy as jnp
from jax import lax
from jax.experimental import pallas as pl
from jax.experimental.pallas import tpu as pltpu


def _dn4_kernel(q_ref, s_ref, o_ref, sn_ref, *, n_k, exact_ties):
    # q_ref: (1, TQ, HW, C)   s_ref: (1, 1, C, SHW)   o_ref: (1, TQ, 1)
    # sn_ref: VMEM scratch (C, SHW) holding the normalized support for the current way.
    qi = pl.program_id(2)

    # Normalize the support column block once per (episode, way); it is reused by every
    # query tile of the inner sweep (support BlockSpec is constant along the qi axis).
    @pl.when(qi == 0)
    def _():
        s = s_ref[0, 0].astype(jnp.float32)                        # (C, SHW)
        # F.normalize(p=2, dim=2): x / max(||x||, 1e-12) == x * rsqrt(max(||x||^2, 1e-24))
        sn_ref[...] = s * lax.rsqrt(
            jnp.maximum(jnp.sum(s * s, axis=0, keepdims=True), 1e-24))

    q = q_ref[0].astype(jnp.float32)                               # (TQ, HW, C)
    tq, hw, c = q.shape
    q2 = q.reshape(tq * hw, c)                                     # (M, C), merge of small q only
    qn = q2 * lax.rsqrt(jnp.maximum(jnp.sum(q2 * q2, axis=-1, keepdims=True), 1e-24))

    # cosine similarity of every query local descriptor vs. every support descriptor (MXU)
    rel = jnp.dot(qn, sn_ref[...], preferred_element_type=jnp.float32)   # (M, SHW)
    shw = rel.shape[-1]

    neg_inf = jnp.float32(-jnp.inf)
    if exact_ties:
        # hoisted once (shape-invariant); only needed for torch-exact tie handling
        iota = lax.broadcasted_iota(jnp.int32, rel.shape, dimension=1)

    vals = rel
    topsum = jnp.zeros((tq * hw, 1), jnp.float32)
    for r in range(n_k):                                           # n_k is small & static
        m = jnp.max(vals, axis=-1, keepdims=True)
        topsum = topsum + m
        if r + 1 < n_k:                                            # last round needs no masking
            if exact_ties:
                # mask only the FIRST occurrence of the max (matches torch.topk sums)
                first = jnp.min(jnp.where(vals == m, iota, shw), axis=-1, keepdims=True)
                vals = jnp.where(iota == first, neg_inf, vals)
            else:
                # fast path: identical result whenever row values are distinct
                vals = jnp.where(vals == m, neg_inf, vals)

    # sum the per-descriptor top-k sums over the HW local descriptors of each query image
    per_q = topsum.reshape(tq, hw).sum(axis=-1, keepdims=True)     # (TQ, 1), tiny reshape
    o_ref[0] = per_q


def _pick_query_tile(wq, hw, shw, c, exact_ties, budget_bytes=24 << 20):
    """Largest divisor of WQ whose working set fits the VMEM budget.

    Fixed overhead: double-buffered support input + normalized-support scratch
    (3 * C * SHW * 4 bytes).  Per query image: double-buffered query input + normalized
    query (3 * HW * C * 4) plus the (2 or 3) live (HW, SHW) f32 arrays of the top-k loop
    (rel, vals[, iota]).  24 MiB keeps us comfortably inside a 48 MiB scoped-VMEM cap
    (safe on v7x's 64 MiB VMEM and well under v5e/v6e's 128 MiB).
    """
    n_live = 3 if exact_ties else 2
    fixed = 3 * c * shw * 4
    per_row = (3 * hw * c + n_live * hw * shw) * 4
    tq = 1
    for cand in range(1, wq + 1):
        if wq % cand == 0 and fixed + cand * per_row <= budget_bytes:
            tq = cand
    return tq


def dn4_layer(query_feat, support_feat, way_num, shot_num, query_num, n_k,
              exact_ties=False):
    t, wq, c, h, w = query_feat.shape
    _, ws, _, _, _ = support_feat.shape
    assert wq == way_num * query_num and ws == way_num * shot_num
    hw = h * w
    shw = shot_num * hw
    assert n_k <= shw, "n_k must not exceed the number of support descriptors"

    # glue: reshape/permute into the kernel layout (plain JAX, no compute)
    q = query_feat.reshape(t, wq, c, hw).transpose(0, 1, 3, 2)          # (t, WQ, HW, C)
    s = support_feat.reshape(t, way_num, shot_num, c, hw)
    s = s.transpose(0, 1, 3, 2, 4).reshape(t, way_num, c, shw)          # (t, WAY, C, SHW)

    tq = _pick_query_tile(wq, hw, shw, c, exact_ties)
    nq = wq // tq
    g = t * way_num * nq

    kernel = functools.partial(_dn4_kernel, n_k=n_k, exact_ties=exact_ties)
    out_flat = pl.pallas_call(
        kernel,
        out_shape=jax.ShapeDtypeStruct((g, tq, 1), jnp.float32),
        grid_spec=pltpu.PrefetchScalarGridSpec(
            num_scalar_prefetch=0,
            grid=(t, way_num, nq),
            in_specs=[
                # query tile: changes with the innermost (query-tile) axis
                pl.BlockSpec((1, tq, hw, c), lambda ti, wy, qi: (ti, qi, 0, 0)),
                # support for one way: constant across the inner axis -> stays resident
                pl.BlockSpec((1, 1, c, shw), lambda ti, wy, qi: (ti, wy, 0, 0)),
            ],
            # one (TQ, 1) column per (episode, way, query-tile)
            out_specs=pl.BlockSpec(
                (1, tq, 1),
                lambda ti, wy, qi: ((ti * way_num + wy) * nq + qi, 0, 0),
            ),
            # normalized-support cache, written once per (episode, way) at qi == 0
            scratch_shapes=[pltpu.VMEM((c, shw), jnp.float32)],
        ),
        compiler_params=pltpu.CompilerParams(
            # inner axis is "arbitrary" so the scratch carry across query tiles is
            # sequential on one core; outer axes still shard across megacore TCs.
            dimension_semantics=("parallel", "parallel", "arbitrary"),
            vmem_limit_bytes=48 * 1024 * 1024,
        ),
    )(q, s)

    # (t*WAY*NQ, TQ, 1) -> (t, WAY, WQ) -> (t, WQ, WAY)   (tiny, plain-JAX glue)
    return out_flat.reshape(t, way_num, wq).transpose(0, 2, 1)


def dn4_ref(query_feat, support_feat, way_num, shot_num, query_num, n_k):
    # Pure-JAX reference mirroring the PyTorch forward exactly.
    t, wq, c, h, w = query_feat.shape
    q = query_feat.reshape(t, way_num * query_num, c, h * w).transpose(0, 1, 3, 2)
    q = q / jnp.maximum(jnp.linalg.norm(q, axis=-1, keepdims=True), 1e-12)
    q = q[:, :, None]                                                   # (t, WQ, 1, HW, C)
    s = support_feat.reshape(t, way_num, shot_num, c, h * w).transpose(0, 1, 3, 2, 4)
    s = s.reshape(t, way_num, c, shot_num * h * w)
    s = s / jnp.maximum(jnp.linalg.norm(s, axis=2, keepdims=True), 1e-12)
    s = s[:, None]                                                      # (t, 1, WAY, C, SHW)
    rel = jnp.matmul(q, s)                                              # (t, WQ, WAY, HW, SHW)
    topv = lax.top_k(rel, n_k)[0]
    return topv.sum(axis=(3, 4))                                        # (t, WQ, WAY)


if __name__ == "__main__":
    # DN4Layer(n_k) has no trainable parameters; n_k is the only hyper-parameter.
    t, way_num, shot_num, query_num = 2, 2, 2, 2
    c, h, w = 32, 4, 4
    n_k = 3

    key = jax.random.PRNGKey(0)
    kq, ks = jax.random.split(key)
    query_feat = jax.random.normal(kq, (t, way_num * query_num, c, h, w), jnp.float32)
    support_feat = jax.random.normal(ks, (t, way_num * shot_num, c, h, w), jnp.float32)

    out = dn4_layer(query_feat, support_feat, way_num, shot_num, query_num, n_k)
    out = jax.block_until_ready(out)

    ref = dn4_ref(query_feat, support_feat, way_num, shot_num, query_num, n_k)
    assert out.shape == (t, way_num * query_num, way_num), out.shape
    assert jnp.allclose(out, ref, atol=1e-4, rtol=1e-4), (out, ref)
    print("KERNEL_OK")
</pallas_src>

<mosaic_0001>
module attributes {stable_mosaic.version = 11 : i64} {
  func.func @_dn4_kernel(%arg0: i32, %arg1: i32, %arg2: i32, %arg3: memref<1x4x16x32xf32, #tpu.memory_space<vmem>>, %arg4: memref<1x1x32x32xf32, #tpu.memory_space<vmem>>, %arg5: memref<1x4x1xf32, #tpu.memory_space<vmem>>, %arg6: memref<32x32xf32, #tpu.memory_space<vmem>>) attributes {dimension_semantics = [#tpu.dimension_semantics<parallel>, #tpu.dimension_semantics<parallel>, #tpu.dimension_semantics<arbitrary>], iteration_bounds = array<i64: 2, 2, 1>, scalar_prefetch = 0 : i64, scratch_operands = 1 : i64, tpu.core_type = #tpu.core_type<tc>, window_params = [{transform_indices = @transform_0, window_bounds = array<i64: 1, 4, 16, 32>}, {transform_indices = @transform_1, window_bounds = array<i64: 1, 1, 32, 32>}, {transform_indices = @transform_2, window_bounds = array<i64: 1, 4, 1>}]} {
    %c0_i32 = arith.constant 0 : i32
    %0 = arith.cmpi eq, %arg2, %c0_i32 : i32
    %1 = arith.extui %0 : i1 to i32
    %c0_i32_0 = arith.constant 0 : i32
    %2 = arith.cmpi ne, %1, %c0_i32_0 : i32
    scf.if %2 {
      %c0_18 = arith.constant 0 : index
      %c0_19 = arith.constant 0 : index
      %c0_20 = arith.constant 0 : index
      %c0_21 = arith.constant 0 : index
      %40 = vector.load %arg4[%c0_18, %c0_19, %c0_20, %c0_21] : memref<1x1x32x32xf32, #tpu.memory_space<vmem>>, vector<1x1x32x32xf32>
      %41 = vector.shape_cast %40 : vector<1x1x32x32xf32> to vector<32x32xf32>
      %42 = arith.mulf %41, %41 : vector<32x32xf32>
      %cst_22 = arith.constant dense<0.000000e+00> : vector<32xf32>
      %43 = vector.multi_reduction <add>, %42, %cst_22 [0] : vector<32x32xf32> to vector<32xf32>
      %44 = vector.shape_cast %43 : vector<32xf32> to vector<1x32xf32>
      %cst_23 = arith.constant 1.000000e-24 : f32
      %45 = vector.broadcast %cst_23 : f32 to vector<1x32xf32>
      %46 = arith.maximumf %44, %45 : vector<1x32xf32>
      %47 = math.rsqrt %46 : vector<1x32xf32>
      %48 = vector.broadcast %47 : vector<1x32xf32> to vector<32x32xf32>
      %49 = arith.mulf %41, %48 : vector<32x32xf32>
      %c0_24 = arith.constant 0 : index
      %c0_25 = arith.constant 0 : index
      %50 = vector.load %arg6[%c0_24, %c0_25] : memref<32x32xf32, #tpu.memory_space<vmem>>, vector<32x32xf32>
      tpu.vector_store %arg6[%c0_24, %c0_25], %49 {strides = array<i32>} : memref<32x32xf32, #tpu.memory_space<vmem>>, vector<32x32xf32>,
    } else {
    }
    %c0 = arith.constant 0 : index
    %c0_1 = arith.constant 0 : index
    %c0_2 = arith.constant 0 : index
    %c0_3 = arith.constant 0 : index
    %3 = vector.load %arg3[%c0, %c0_1, %c0_2, %c0_3] : memref<1x4x16x32xf32, #tpu.memory_space<vmem>>, vector<1x4x16x32xf32>
    %4 = vector.shape_cast %3 : vector<1x4x16x32xf32> to vector<4x16x32xf32>
    %5 = vector.shape_cast %4 : vector<4x16x32xf32> to vector<64x32xf32>
    %6 = arith.mulf %5, %5 : vector<64x32xf32>
    %cst = arith.constant dense<0.000000e+00> : vector<64xf32>
    %7 = vector.multi_reduction <add>, %6, %cst [1] : vector<64x32xf32> to vector<64xf32>
    %8 = vector.shape_cast %7 : vector<64xf32> to vector<64x1xf32>
    %cst_4 = arith.constant 1.000000e-24 : f32
    %9 = vector.broadcast %cst_4 : f32 to vector<64x1xf32>
    %10 = arith.maximumf %8, %9 : vector<64x1xf32>
    %11 = math.rsqrt %10 : vector<64x1xf32>
    %12 = vector.broadcast %11 : vector<64x1xf32> to vector<64x32xf32>
    %13 = arith.mulf %5, %12 : vector<64x32xf32>
    %c0_5 = arith.constant 0 : index
    %c0_6 = arith.constant 0 : index
    %14 = vector.load %arg6[%c0_5, %c0_6] : memref<32x32xf32, #tpu.memory_space<vmem>>, vector<32x32xf32>
    %cst_7 = arith.constant dense<0.000000e+00> : vector<64x32xf32>
    %15 = tpu.matmul %13, %14, %cst_7 {dimension_numbers = #tpu.dot_dimension_numbers<[1], [0], [0], [1], [0, 0, 1, 1], [], []>} : vector<64x32xf32>, vector<32x32xf32>, vector<64x32xf32> -> vector<64x32xf32>
    %cst_8 = arith.constant 0.000000e+00 : f32
    %16 = vector.broadcast %cst_8 : f32 to vector<64x1xf32>
    %cst_9 = arith.constant dense<0xFF800000> : vector<64xf32>
    %17 = vector.multi_reduction <maximumf>, %15, %cst_9 [1] : vector<64x32xf32> to vector<64xf32>
    %18 = vector.shape_cast %17 : vector<64xf32> to vector<64x1xf32>
    %19 = arith.addf %16, %18 : vector<64x1xf32>
    %20 = vector.broadcast %18 : vector<64x1xf32> to vector<64x32xf32>
    %21 = arith.cmpf oeq, %15, %20 : vector<64x32xf32>
    %cst_10 = arith.constant 0xFF800000 : f32
    %22 = vector.broadcast %cst_10 : f32 to vector<64x32xf32>
    %23 = arith.select %21, %22, %15 : vector<64x32xi1>, vector<64x32xf32>
    %cst_11 = arith.constant dense<0xFF800000> : vector<64xf32>
    %24 = vector.multi_reduction <maximumf>, %23, %cst_11 [1] : vector<64x32xf32> to vector<64xf32>
    %25 = vector.shape_cast %24 : vector<64xf32> to vector<64x1xf32>
    %26 = arith.addf %19, %25 : vector<64x1xf32>
    %27 = vector.broadcast %25 : vector<64x1xf32> to vector<64x32xf32>
    %28 = arith.cmpf oeq, %23, %27 : vector<64x32xf32>
    %cst_12 = arith.constant 0xFF800000 : f32
    %29 = vector.broadcast %cst_12 : f32 to vector<64x32xf32>
    %30 = arith.select %28, %29, %23 : vector<64x32xi1>, vector<64x32xf32>
    %cst_13 = arith.constant dense<0xFF800000> : vector<64xf32>
    %31 = vector.multi_reduction <maximumf>, %30, %cst_13 [1] : vector<64x32xf32> to vector<64xf32>
    %32 = vector.shape_cast %31 : vector<64xf32> to vector<64x1xf32>
    %33 = arith.addf %26, %32 : vector<64x1xf32>
    %34 = vector.shape_cast %33 : vector<64x1xf32> to vector<4x16xf32>
    %cst_14 = arith.constant dense<0.000000e+00> : vector<4xf32>
    %35 = vector.multi_reduction <add>, %34, %cst_14 [1] : vector<4x16xf32> to vector<4xf32>
    %36 = vector.shape_cast %35 : vector<4xf32> to vector<4x1xf32>
    %c0_15 = arith.constant 0 : index
    %c0_16 = arith.constant 0 : index
    %c0_17 = arith.constant 0 : index
    %37 = vector.load %arg5[%c0_15, %c0_16, %c0_17] : memref<1x4x1xf32, #tpu.memory_space<vmem>>, vector<1x4x1xf32>
    %38 = vector.shape_cast %37 : vector<1x4x1xf32> to vector<4x1xf32>
    %39 = vector.shape_cast %36 : vector<4x1xf32> to vector<1x4x1xf32>
    tpu.vector_store %arg5[%c0_15, %c0_16, %c0_17], %39 {strides = array<i32>} : memref<1x4x1xf32, #tpu.memory_space<vmem>>, vector<1x4x1xf32>,
    return
  }
  func.func @transform_0(%arg0: i32, %arg1: i32, %arg2: i32) -> (i32, i32, i32, i32) {
    %c0_i32 = arith.constant 0 : i32
    %c0_i32_0 = arith.constant 0 : i32
    %c0_i32_1 = arith.constant 0 : i32
    return %arg0, %arg2, %c0_i32, %c0_i32_0 : i32, i32, i32, i32
  }
  func.func @transform_1(%arg0: i32, %arg1: i32, %arg2: i32) -> (i32, i32, i32, i32) {
    %c0_i32 = arith.constant 0 : i32
    %c0_i32_0 = arith.constant 0 : i32
    %c0_i32_1 = arith.constant 0 : i32
    return %arg0, %arg1, %c0_i32, %c0_i32_0 : i32, i32, i32, i32
  }
  func.func @transform_2(%arg0: i32, %arg1: i32, %arg2: i32) -> (i32, i32, i32) {
    %c2_i32 = arith.constant 2 : i32
    %0 = arith.muli %arg0, %c2_i32 : i32
    %1 = arith.addi %0, %arg1 : i32
    %c1_i32 = arith.constant 1 : i32
    %2 = arith.muli %1, %c1_i32 : i32
    %3 = arith.addi %2, %arg2 : i32
    %c0_i32 = arith.constant 0 : i32
    %c0_i32_0 = arith.constant 0 : i32
    %c0_i32_1 = arith.constant 0 : i32
    return %3, %c0_i32, %c0_i32_0 : i32, i32, i32
  }
}

</mosaic_0001>

<bundles_post_ra>
// kernel: tpu_custom_call.1
= control target key start
LH: loop header
LB: loop body
LE: loop exit
PB: predicated region body
PF: predicated region fallthrough
CT: control target
= control target key end

     0   :  { %s1500_s0 = inlined_call_operand.hbm [shape: f32[2,4,16,32], index: 0, kind: input, shape index: {}]   ;;  %s1501_s1 = inlined_call_operand.hbm [shape: f32[2,2,32,32], index: 1, kind: input, shape index: {}]   ;;  %s1502_s2 = inlined_call_operand.vmem [shape: f32[4,4,1], index: 2, kind: output, shape index: {}]  }
   0x1   :  { %1507 = sst [smem:[#allocation13_spill]] %s1500_s0 }
   0x2   :  { %1508 = sst [smem:[#allocation14_spill]] %s1502_s2 }
   0x3   :  { %7 = vsyncpa [#allocation4], 0 }
   0x4   :  { %9 = vsyncpa [#allocation4 + $0x1], 0 }
   0x5   :  { %10 = vsyncpa [#allocation6], 0 }
   0x6   :  { %12 = vsyncpa [#allocation6 + $0x1], 0  ;;  %s1117_s9 = smov 0   ;;  %s1119_s10 = smov 0  }
   0x7   :  { %s1121_s11 = smov 0   ;;  %s1123_s12 = smov 0  }
   0x8   :  { %s1125_s13 = smov 0   ;;  %s1127_s14 = smov 0  }
   0x9   :  { %s1129_s15 = smov 0   ;;  %s1131_s16 = smov 0  }
   0xa   :  { %s1133_s17 = smov 0   ;;  %s1135_s18 = smov 0  }
   0xb   :  { %s1137_s19 = smov 0  }
   0xc LB: > { %1509 = sst [smem:[#allocation9_spill]] %s1082_s15  ;;  %s783_s20 = sadd.s32 4294967295, %s1098_s19   ;;  %s1098_s19 = sphi %s1137_s19, %s18_s19   ;;  %s1094_s18 = sphi %s1135_s18, %s1535_s18   ;;  %s1090_s17 = sphi %s1133_s17, %s1527_s17   ;;  %s1086_s16 = sphi %s1131_s16, %s1534_s16   ;;  %s1082_s15 = sphi %s1129_s15, %s1526_s15   ;;  %s1078_s14 = sphi %s1127_s14, %s1533_s14   ;;  %s1074_s13 = sphi %s1125_s13, %s1532_s13   ;;  %s1070_s12 = sphi %s1123_s12, %s1531_s12   ;;  %s1066_s11 = sphi %s1121_s11, %s1530_s11   ;;  %s1062_s10 = sphi %s1119_s10, %s1529_s10   ;;  %s1058_s9 = sphi %s1117_s9, %s1528_s9  }
   0xd   : > { %1510 = sst [smem:[#allocation10_spill]] %s1086_s16  ;;  %s37_s21 = sadd.s32 1, %s1094_s18 }
   0xe   : > { %1511 = sst [smem:[#allocation11_spill]] %s1090_s17  ;;  %s46_s22 = sadd.s32 1, %s1078_s14 }
   0xf   : > { %p53_p0 = scmp.ne.s32.totalorder %s1078_s14, %s1074_s13  ;;  %p54_p1 = scmp.eq.s32.totalorder %s1098_s19, 0 }
  0x10   : > { %p59_p2 = scmp.ne.s32.totalorder %s1074_s13, %s1070_s12  ;;  %p1177_p3 = scmp.eq.s32.totalorder %s783_s20, 0 }
  0x11   : > { %p55_p4 = por %p54_p1, %p53_p0  ;;  %p835_p5 = scmp.lt.s32.totalorder %s1098_s19, 4 }
  0x12   : > { %p1186_p6 = por %p1177_p3, %p59_p2  ;;  %s143_s25 = sand.u32 1, %s1078_s14  }
  0x13   : > { %s789_s26 = sshll.u32 %s143_s25, 6  ;;  %s811_s27 = sshll.u32 %s1094_s18, 6 }
  0x14   : > { %s1514_s0 = sld [smem:[#allocation13_spill]]  ;;  %s147_s3 = scalar_lea.vmem [#allocation3], %s789_s26 }
  0x15   : > { %s158_s4 = sshll.u32 %s147_s3, 4  ;;  %p829_p7 = pnand %p835_p5, %p55_p4  ;;  %s159_s4 = int_to_ptr.vmem [resolvable:$true] %s158_s4 }
  0x16   : > { %p796_p8 = scmp.ge.s32.totalorder %s1098_s19, 1  ;;  %s144_s6 = scalar_lea.sflag [#allocation4], %s143_s25 }
  0x17   : > { %s1503_s7 = smov 128   ;;  %s1504_s8 = smov 8  }
  0x18   : > { %p190_p9 = scmp.lt.s32.totalorder %s1098_s19, 5  ;;  %s33_s20 = sadd.s32 1, %s1090_s17 }
  0x19   : > { %s74_s26 = sadd.s32 1, %s1066_s11  ;;  %p35_p11 = scmp.ge.s32.totalorder %s33_s20, 2 }
  0x1a   : > { %s155_s30 = scalar_lea.hbm %s1514_s0, %s811_s27  ;;  %p1202_p10 = pnand %p796_p8, %p190_p9 }
  0x1b   : > { %s156_s5 = sshll.u32 %s155_s30, 4  ;;  %p81_p12 = scmp.ne.s32.totalorder %s1066_s11, %s1062_s10  ;;  %s157_s5 = int_to_ptr.hbm [resolvable:$true] %s156_s5 }
  0x1c   : > { %831 = dma.hbm_to_vmem [thread:$0]  (!%p829_p7), %s157_s5, 1024, %s159_s4, %s144_s6, %s1503_s7, %s1503_s7, %s1504_s8  }
  0x1d   : > { %p87_p13 = scmp.ne.s32.totalorder %s1062_s10, %s1058_s9  ;;  %s168_s25 = sand.u32 1, %s1066_s11  }
  0x1e   : > { %s1537_s20 = smov (%p35_p11, %s33_s20), 0  ;;  %s1539_s21 = smov (!%p35_p11, %s37_s21), %s1094_s18 }
  0x1f   : > { %1516 = sst [smem:[#allocation12_spill]] %s1537_s20  ;;  %s70_s27 = ssub.s32 %s1090_s17, %s1537_s20 }
  0x20   : > { %p1222_p0 = por %p81_p12, %p54_p1  ;;  %p39_p2 = scmp.ge.s32.totalorder %s1539_s21, 2 }
  0x21   : > { %p1228_p4 = por %p87_p13, %p1177_p3  ;;  %s792_s9 = sshll.u32 %s168_s25, 5 }
  0x22   : > { %s1541_s21 = smov (%p39_p2, %s1539_s21), 0  ;;  %s793_s30 = sshll.u32 %s1090_s17, 2 }
  0x23   : > { %s41_s3 = ssub.s32 %s1094_s18, %s1541_s21  ;;  %s794_s4 = sshll.u32 %s1094_s18, 3 }
  0x24   : > { %p44_p7 = scmp.eq.s32.totalorder %s41_s3, 0  ;;  %s71_s5 = sor.u32 %s70_s27, %s41_s3 }
  0x25   : > { %p72_p1 = scmp.eq.s32.totalorder %s71_s5, 0  ;;  %s177_s6 = sadd.s32 %s794_s4, %s793_s30 }
  0x26   : > { %s1241_s7 = scalar_select %p44_p7, %s1078_s14, %s46_s22  }
  0x27   : > { %s1244_s23 = scalar_select %p72_p1, %s1066_s11, %s74_s26  }
  0x28   : > { %s795_s8 = sshll.u32 %s177_s6, 3  ;;  %s172_s0 = scalar_lea.vmem [#allocation5], %s792_s9 }
  0x29   : > { %s182_s20 = sshll.u32 %s172_s0, 4  ;;  %s179_s16 = scalar_lea.hbm %s1501_s1, %s795_s8  ;;  %s183_s20 = int_to_ptr.vmem [resolvable:$true] %s182_s20 }
  0x2a   : > { %s180_s17 = sshll.u32 %s179_s16, 4  ;;  %p832_p3 = pnand %p835_p5, %p1222_p0  ;;  %s181_s17 = int_to_ptr.hbm [resolvable:$true] %s180_s17 }
  0x2b   : > { %s169_s27 = scalar_lea.sflag [#allocation6], %s168_s25  ;;  %s1519_s30 = smov 8  }
  0x2c   : > { %s1520_s3 = smov 128   ;;  %194 = sbr.rel (%p1202_p10) target bundleno = 827 (0x33b), region = 28 }
  0x2d   : > { %834 = dma.hbm_to_vmem [thread:$0]  (!%p832_p3), %s181_s17, 512, %s183_s20, %s169_s27, %s1520_s3, %s1520_s3, %s1519_s30  }
  0x2e   : > { %s196_s0 = sand.u32 (!%p1202_p10), 1, %s1074_s13  }
  0x2f   : > { %s797_s22 = sshll.u32 (!%p1202_p10), %s196_s0, 6  ;;  %s197_s2 = scalar_lea.sflag (!%p1202_p10), [#allocation4], %s196_s0 }
  0x30   : > { %s1259_s15 = scalar_lea.vmem (!%p1202_p10), [#allocation3], %s797_s22 }
  0x31   : > { %1049 = dma.done.wait (%p1186_p6), %s197_s2, 1024  }
  0x32   : > { %1051 = vsyncadd (%p1186_p6), %s197_s2, 4294966272  ;;  %s206_s16 = sand.u32 1, %s1062_s10  }
  0x33   : > { %s798_s8 = sshll.u32 %s206_s16, 5  ;;  %s207_s17 = scalar_lea.sflag [#allocation6], %s206_s16 }
  0x34   : > { %s1266_s20 = scalar_lea.vmem [#allocation5], %s798_s8 }
  0x35   : > { %1053 = dma.done.wait (%p1228_p4), %s207_s17, 512  }
  0x36   : > { %1055 = vsyncadd (%p1228_p4), %s207_s17, 4294966784  ;;  %vm262_vm0 = vcmask 261120   ;;  %v1273_v0 = vld [vmem:[%s1259_s15 + $0x28] sm:$0xff]  ;;  %v1276_v1 = vld [vmem:[%s1259_s15 + $0x20] sm:$0xff]  ;;  %s1523_s24 = sld [smem:[#allocation10_spill]] }
  0x37   : > { %v1279_v2 = vld [vmem:[%s1259_s15] sm:$0xff]  ;;  %v308_v3 = vmul.f32 %v1273_v0, %v1273_v0  ;;  %v307_v4 = vmul.f32 %v1276_v1, %v1276_v1  ;;  %v1288_v6 = vld [vmem:[%s1259_s15 + $0x38] sm:$0xff]  ;;  %v1291_v7 = vld [vmem:[%s1259_s15 + $0x30] sm:$0xff]  ;;  %s1524_s12 = sld [smem:[#allocation9_spill]] }
  0x38   : > { %v303_v5 = vmul.f32 %v1279_v2, %v1279_v2  ;;  %v1297_v11 = vld [vmem:[%s1259_s15 + $0x10] sm:$0xff]  ;;  %v310_v12 = vmul.f32 %v1288_v6, %v1288_v6  ;;  %v309_v13 = vmul.f32 %v1291_v7, %v1291_v7  ;;  %v1309_v18 = vld [vmem:[%s1259_s15 + $0x8] sm:$0xff]  ;;  %v1312_v19 = vld [vmem:[%s1259_s15 + $0x18] sm:$0xff]  ;;  %s1525_s4 = sld [smem:[#allocation14_spill]] }
  0x39   : > { %v327_v8 = vsel %vm262_vm0, %v308_v3, 0.0  ;;  %v324_v9 = vsel %vm262_vm0, %v307_v4, 0.0  ;;  %v305_v14 = vmul.f32 %v1297_v11, %v1297_v11  ;;  %v304_v20 = vmul.f32 %v1309_v18, %v1309_v18  ;;  %v254_v24 = vld [vmem:[%s1266_s20] sm:$0xff]  ;;  %v255_v25 = vld [vmem:[%s1266_s20 + $0x8] sm:$0xff]  ;;  %v256_v28 = vld [vmem:[%s1266_s20 + $0x10] sm:$0xff] }
  0x3a   : > { %v312_v10 = vsel %vm262_vm0, %v303_v5, 0.0  ;;  %328 = vadd.xlane.f32.xlu2 %v327_v8  ;;  %325 = vadd.xlane.f32.xlu0 %v324_v9  ;;  %v333_v15 = vsel %vm262_vm0, %v310_v12, 0.0  ;;  %v330_v16 = vsel %vm262_vm0, %v309_v13, 0.0  ;;  %v306_v21 = vmul.f32 %v1312_v19, %v1312_v19  ;;  %v257_v32 = vld [vmem:[%s1266_s20 + $0x18] sm:$0xff] }
  0x3b   : > { %313 = vadd.xlane.f32.xlu1 %v312_v10  ;;  %v318_v17 = vsel %vm262_vm0, %v305_v14, 0.0  ;;  %v315_v22 = vsel %vm262_vm0, %v304_v20, 0.0  ;;  %v258_v26 = vmul.f32 %v254_v24, %v254_v24  ;;  %v259_v27 = vmul.f32 %v255_v25, %v255_v25 }
  0x3c   : > { %v321_v23 = vsel %vm262_vm0, %v306_v21, 0.0  ;;  %v260_v29 = vmul.f32 %v256_v28, %v256_v28  ;;  %v261_v34 = vmul.f32 %v257_v32, %v257_v32  ;;  %s799_s26 = sshll.u32 %s1523_s24, 1 }
  0x3d   : > { %v263_v30 = vsel %vm262_vm0, %v258_v26, 0.0  ;;  %v264_v31 = vsel %vm262_vm0, %v259_v27, 0.0  ;;  %s241_s25 = sadd.s32 %s1524_s12, %s799_s26 }
  0x3e   : > { %v265_v33 = vadd.f32 %v264_v31, %v263_v30  ;;  %v266_v35 = vsel %vm262_vm0, %v260_v29, 0.0  ;;  %v268_v37 = vsel %vm262_vm0, %v261_v34, 0.0  ;;  %p243_p5 = scmp.lt.s32.totalorder %s241_s25, 3 }
  0x40   : > { %v267_v36 = vadd.f32 %v266_v35, %v265_v33  ;;  %s1543_s25 = smov (!%p243_p5, %s241_s25), 3 }
  0x41   : > { %s800_s28 = sshll.u32 %s1543_s25, 2 }
  0x42   : > { %334 = vadd.xlane.f32.xlu2 %v333_v15  ;;  %331 = vadd.xlane.f32.xlu0 %v330_v16  ;;  %v269_v38 = vadd.f32 %v268_v37, %v267_v36  ;;  %s246_s5 = scalar_lea.vmem %s1525_s4, %s800_s28 }
  0x43   : > { %319 = vadd.xlane.f32.xlu1 %v318_v17 }
  0x44   : > { %v270_v39 = vrot.slane %v269_v38, 4 }
  0x46   : > { %v271_v40 = vadd.f32 %v270_v39, %v269_v38 }
  0x48   : > { %v272_v41 = vrot.slane %v271_v40, 2 }
  0x4a   : > { %316 = vadd.xlane.f32.xlu0 %v315_v22  ;;  %v273_v42 = vadd.f32 %v272_v41, %v271_v40 }
  0x4b   : > { %322 = vadd.xlane.f32.xlu1 %v321_v23 }
  0x4c   : > { %v274_v43 = vrot.slane %v273_v42, 1 }
  0x4e   : > { %v275_v44 = vadd.f32 %v274_v43, %v273_v42 }
  0x50   : > { %v276_v45 = vmax.f32 %v275_v44, 1e-24 }
  0x52   : > { %926 = vrsqrt.f32 %v276_v45  ;;  %vm283_vm1 = vweird.f32 %v276_v45 }
  0x58   : > { %v927_v46 = vpop.eup %926 }
  0x59   : > { %v278_v47 = vmul.f32 %v927_v46, %v276_v45  ;;  %vm284_vm2 = vweird.f32 %v927_v46 }
  0x5a   : > { %vm285_vm3 = vmor %vm283_vm1, %vm284_vm2 }
  0x5b   : > { %v279_v48 = vmul.f32 %v927_v46, %v278_v47 }
  0x5d   : > { %v280_v49 = vmul.f32 0.5, %v279_v48 }
  0x5f   : > { %v281_v50 = vsub.f32 1.5, %v280_v49 }
  0x61   : > { %v282_v51 = vmul.f32 %v927_v46, %v281_v50 }
  0x63   : > { %v286_v52 = vsel %vm285_vm3, %v927_v46, %v282_v51 }
  0x64   : > { %v290_v53 = vmul.f32 %v286_v52, %v257_v32  ;;  %v289_v54 = vmul.f32 %v286_v52, %v256_v28  ;;  %v288_v55 = vmul.f32 %v286_v52, %v255_v25  ;;  %v287_v56 = vmul.f32 %v286_v52, %v254_v24 }
  0x66   : > { %294 = vst.msk [vmem:[#allocation2 + $0x18] sm:$0xff] %vm262_vm0, %v290_v53 }
  0x67   : > { %293 = vst.msk [vmem:[#allocation2 + $0x10] sm:$0xff] %vm262_vm0, %v289_v54 }
  0x68   : > { %292 = vst.msk [vmem:[#allocation2 + $0x8] sm:$0xff] %vm262_vm0, %v288_v55 }
  0x69   : > { %291 = vst.msk [vmem:[#allocation2] sm:$0xff] %vm262_vm0, %v287_v56 }
  0x6d   : > { %v435_v57 = vld [vmem:[#allocation2 + $0x18] sm:$0xff] }
  0x6e   : > { %472 = vmatpush.msra.mxu0 %v435_v57  ;;  %813 = vmatpush.msra.mxu2 %v435_v57  ;;  %v434_v58 = vld [vmem:[#allocation2 + $0x10] sm:$0xff] }
  0x6f   : > { %812 = vmatpush.msra.mxu1 %v435_v57  ;;  %814 = vmatpush.msra.mxu3 %v435_v57  ;;  %v433_v59 = vld [vmem:[#allocation2 + $0x8] sm:$0xff] }
  0x70   : > { %473 = vmatpush.msra.mxu0 %v434_v58  ;;  %816 = vmatpush.msra.mxu2 %v434_v58  ;;  %v432_v60 = vld [vmem:[#allocation2] sm:$0xff] }
  0x71   : > { %815 = vmatpush.msra.mxu1 %v434_v58  ;;  %817 = vmatpush.msra.mxu3 %v434_v58 }
  0x72   : > { %474 = vmatpush.msra.mxu0 %v433_v59  ;;  %819 = vmatpush.msra.mxu2 %v433_v59 }
  0x73   : > { %818 = vmatpush.msra.mxu1 %v433_v59  ;;  %820 = vmatpush.msra.mxu3 %v433_v59 }
  0x74   : > { %475 = vmatpush.msra.mxu0 %v432_v60  ;;  %822 = vmatpush.msra.mxu2 %v432_v60 }
  0x75   : > { %821 = vmatpush.msra.mxu1 %v432_v60  ;;  %823 = vmatpush.msra.mxu3 %v432_v60 }
  0xad   : > { %v329_v61 = vpop.xlane.xlu2 %328  ;;  %v326_v62 = vpop.xlane.xlu0 %325 }
  0xae   : > { %v1332_v63 = vmax.f32 %v329_v61, 1e-24  ;;  %v340_v3 = vmax.f32 %v326_v62, 1e-24  ;;  %v314_v4 = vpop.xlane.xlu1 %313 }
  0xaf   : > { %v336_v5 = vmax.f32 %v314_v4, 1e-24 }
  0xb0   : > { %928 = vrsqrt.f32 %v1332_v63  ;;  %vm390_vm5 = vweird.f32 %v340_v3  ;;  %vm400_vm9 = vweird.f32 %v1332_v63 }
  0xb1   : > { %930 = vrsqrt.f32 %v340_v3  ;;  %vm350_vm7 = vweird.f32 %v336_v5 }
  0xb2   : > { %932 = vrsqrt.f32 %v336_v5 }
  0xb5   : > { %v335_v8 = vpop.xlane.xlu2 %334  ;;  %v332_v9 = vpop.xlane.xlu0 %331 }
  0xb6   : > { %v1335_v10 = vpop.eup %928  ;;  %v1337_v12 = vmax.f32 %v335_v8, 1e-24  ;;  %v1339_v13 = vmax.f32 %v332_v9, 1e-24  ;;  %v320_v14 = vpop.xlane.xlu1 %319 }
  0xb7   : > { %v931_v15 = vpop.eup %930  ;;  %v395_v16 = vmul.f32 %v1335_v10, %v1332_v63  ;;  %v1343_v17 = vmax.f32 %v320_v14, 1e-24  ;;  %vm401_vm11 = vweird.f32 %v1335_v10 }
  0xb8   : > { %v933_v20 = vpop.eup %932  ;;  %v385_v21 = vmul.f32 %v931_v15, %v340_v3  ;;  %934 = vrsqrt.f32 %v1337_v12  ;;  %vm391_vm4 = vweird.f32 %v931_v15  ;;  %vm1372_vm14 = vmor %vm400_vm9, %vm401_vm11  ;;  %vm410_vm15 = vweird.f32 %v1339_v13 }
  0xb9   : > { %v345_v22 = vmul.f32 %v933_v20, %v336_v5  ;;  %936 = vrsqrt.f32 %v1339_v13  ;;  %v396_v23 = vmul.f32 %v1335_v10, %v395_v16  ;;  %vm351_vm6 = vweird.f32 %v933_v20  ;;  %vm392_vm8 = vmor %vm390_vm5, %vm391_vm4 }
  0xba   : > { %v386_v24 = vmul.f32 %v931_v15, %v385_v21  ;;  %938 = vrsqrt.f32 %v1343_v17  ;;  %vm352_vm10 = vmor %vm350_vm7, %vm351_vm6  ;;  %vm370_vm2 = vweird.f32 %v1343_v17  ;;  %vm420_vm4 = vweird.f32 %v1337_v12 }
  0xbb   : > { %v346_v25 = vmul.f32 %v933_v20, %v345_v22  ;;  %v397_v30 = vmul.f32 0.5, %v396_v23 }
  0xbc   : > { %v387_v26 = vmul.f32 0.5, %v386_v24 }
  0xbd   : > { %v347_v27 = vmul.f32 0.5, %v346_v25  ;;  %v317_v28 = vpop.xlane.xlu0 %316  ;;  %v398_v42 = vsub.f32 1.5, %v397_v30 }
  0xbe   : > { %v1349_v29 = vpop.eup %934  ;;  %v388_v31 = vsub.f32 1.5, %v387_v26  ;;  %v1351_v32 = vmax.f32 %v317_v28, 1e-24  ;;  %v323_v33 = vpop.xlane.xlu1 %322 }
  0xbf   : > { %v937_v34 = vpop.eup %936  ;;  %v348_v35 = vsub.f32 1.5, %v347_v27  ;;  %v415_v36 = vmul.f32 %v1349_v29, %v1337_v12  ;;  %v1355_v37 = vmax.f32 %v323_v33, 1e-24  ;;  %v399_v56 = vmul.f32 %v1335_v10, %v398_v42 }
  0xc0   : > { %v939_v38 = vpop.eup %938  ;;  %v405_v39 = vmul.f32 %v937_v34, %v1339_v13  ;;  %940 = vrsqrt.f32 %v1351_v32  ;;  %v389_v45 = vmul.f32 %v931_v15, %v388_v31  ;;  %vm411_vm12 = vweird.f32 %v937_v34 }
  0xc1   : > { %v416_v40 = vmul.f32 %v1349_v29, %v415_v36  ;;  %v365_v41 = vmul.f32 %v939_v38, %v1343_v17  ;;  %942 = vrsqrt.f32 %v1355_v37  ;;  %v349_v44 = vmul.f32 %v933_v20, %v348_v35  ;;  %vm412_vm1 = vmor %vm410_vm15, %vm411_vm12 }
  0xc2   : > { %v406_v43 = vmul.f32 %v937_v34, %v405_v39  ;;  %v393_v50 = vsel %vm392_vm8, %v931_v15, %v389_v45  ;;  %vm371_vm13 = vweird.f32 %v939_v38  ;;  %v403_v63 = vsel %vm1372_vm14, %v1335_v10, %v399_v56 }
  0xc3   : > { %v366_v46 = vmul.f32 %v939_v38, %v365_v41  ;;  %v417_v47 = vmul.f32 0.5, %v416_v40  ;;  %v353_v49 = vsel %vm352_vm10, %v933_v20, %v349_v44  ;;  %v428_v53 = vmul.f32 %v393_v50, %v1276_v1  ;;  %vm372_vm3 = vmor %vm370_vm2, %vm371_vm13 }
  0xc4   : > { %v407_v48 = vmul.f32 0.5, %v406_v43  ;;  %v424_v52 = vmul.f32 %v353_v49, %v1279_v2  ;;  %vm421_vm5 = vweird.f32 %v1349_v29  ;;  %v429_v20 = vmul.f32 %v403_v63, %v1273_v0 }
  0xc5   : > { %v367_v51 = vmul.f32 0.5, %v366_v46  ;;  %805 = vmatmul.msk.f32.vlgmr.msra.gmra.mxu2 %vm262_vm0, %v428_v53  ;;  %v418_v1 = vsub.f32 1.5, %v417_v47  ;;  %vm422_vm8 = vmor %vm420_vm4, %vm421_vm5  ;;  %vm360_vm9 = vweird.f32 %v1351_v32  ;;  %vm380_vm11 = vweird.f32 %v1355_v37 }
  0xc6   : > { %v941_v54 = vpop.eup %940  ;;  %v408_v55 = vsub.f32 1.5, %v407_v48  ;;  %801 = vmatmul.msk.f32.vlgmr.msra.gmra.mxu0 %vm262_vm0, %v424_v52 }
  0xc7   : > { %v943_v57 = vpop.eup %942  ;;  %v368_v58 = vsub.f32 1.5, %v367_v51  ;;  %v355_v59 = vmul.f32 %v941_v54, %v1351_v32  ;;  %v419_v16 = vmul.f32 %v1349_v29, %v418_v1  ;;  %vm361_vm6 = vweird.f32 %v941_v54 }
  0xc8   : > { %v375_v60 = vmul.f32 %v943_v57, %v1355_v37  ;;  %v409_v61 = vmul.f32 %v937_v34, %v408_v55  ;;  %vm381_vm7 = vweird.f32 %v943_v57  ;;  %vm362_vm10 = vmor %vm360_vm9, %vm361_vm6 }
  0xc9   : > { %v356_v62 = vmul.f32 %v941_v54, %v355_v59  ;;  %v369_v3 = vmul.f32 %v939_v38, %v368_v58  ;;  %v423_v0 = vsel %vm422_vm8, %v1349_v29, %v419_v16  ;;  %vm382_vm12 = vmor %vm380_vm11, %vm381_vm7 }
  0xca   : > { %v376_v4 = vmul.f32 %v943_v57, %v375_v60  ;;  %v413_v5 = vsel %vm412_vm1, %v937_v34, %v409_v61  ;;  %v431_v12 = vmul.f32 %v423_v0, %v1288_v6 }
  0xcb   : > { %v357_v8 = vmul.f32 0.5, %v356_v62  ;;  %v373_v9 = vsel %vm372_vm3, %v939_v38, %v369_v3  ;;  %v430_v13 = vmul.f32 %v413_v5, %v1291_v7 }
  0xcc   : > { %v377_v14 = vmul.f32 0.5, %v376_v4  ;;  %v426_v15 = vmul.f32 %v373_v9, %v1297_v11 }
  0xcd   : > { %v358_v17 = vsub.f32 1.5, %v357_v8  ;;  %807 = vmatmul.msk.f32.vlgmr.msra.gmra.mxu3 %vm262_vm0, %v430_v13  ;;  %806 = vmatmul.msk.f32.gmra.mxu2 %vm262_vm0, %v429_v20 }
  0xce   : > { %v378_v10 = vsub.f32 1.5, %v377_v14  ;;  %803 = vmatmul.msk.f32.vlgmr.msra.gmra.mxu1 %vm262_vm0, %v426_v15 }
  0xcf   : > { %v359_v7 = vmul.f32 %v941_v54, %v358_v17 }
  0xd0   : > { %v379_v11 = vmul.f32 %v943_v57, %v378_v10 }
  0xd1   : > { %v363_v21 = vsel %vm362_vm10, %v941_v54, %v359_v7 }
  0xd2   : > { %v425_v22 = vmul.f32 %v363_v21, %v1309_v18  ;;  %v383_v23 = vsel %vm382_vm12, %v943_v57, %v379_v11 }
  0xd3   : > { %v427_v24 = vmul.f32 %v383_v23, %v1312_v19 }
  0xd4   : > { %802 = vmatmul.msk.f32.gmra.mxu0 %vm262_vm0, %v425_v22 }
  0xd5   : > { %808 = vmatmul.msk.f32.gmra.mxu3 %vm262_vm0, %v431_v12 }
  0xd6   : > { %804 = vmatmul.msk.f32.gmra.mxu1 %vm262_vm0, %v427_v24 }
 0x143   : > { %v477_v25 = vpop.f32.mrf.mxu0 }
 0x144   : > { %v501_v26 = vsel %vm262_vm0, %v477_v25, -inf }
 0x145   : > { %502 = vmax.xlane.f32.xlu2 %v501_v26 }
 0x148   : > { %v489_v27 = vpop.f32.mrf.mxu2 }
 0x149   : > { %v513_v28 = vsel %vm262_vm0, %v489_v27, -inf }
 0x14a   : > { %514 = vmax.xlane.f32.xlu0 %v513_v28  ;;  %v637_v28 = vlaneseq }
 0x14b   : > { %v483_v29 = vpop.f32.mrf.mxu1 }
 0x14c   : > { %v507_v18 = vsel %vm262_vm0, %v483_v29, -inf }
 0x14d   : > { %508 = vmax.xlane.f32.xlu1 %v507_v18 }
 0x150   : > { %v495_v19 = vpop.f32.mrf.mxu3  ;;  %v492_v30 = vpop.f32.mrf.mxu2 }
 0x151   : > { %v480_v6 = vpop.f32.mrf.mxu0  ;;  %v516_v33 = vsel %vm262_vm0, %v492_v30, -inf  ;;  %v519_v37 = vsel %vm262_vm0, %v495_v19, -inf }
 0x152   : > { %v504_v31 = vsel %vm262_vm0, %v480_v6, -inf }
 0x153   : > { %v486_v32 = vpop.f32.mrf.mxu1  ;;  %505 = vmax.xlane.f32.xlu0 %v504_v31 }
 0x154   : > { %v510_v34 = vsel %vm262_vm0, %v486_v32, -inf }
 0x155   : > { %517 = vmax.xlane.f32.xlu1 %v516_v33  ;;  %511 = vmax.xlane.f32.xlu2 %v510_v34 }
 0x158   : > { %v498_v35 = vpop.f32.mrf.mxu3 }
 0x159   : > { %v522_v36 = vsel %vm262_vm0, %v498_v35, -inf }
 0x15b   : > { %523 = vmax.xlane.f32.xlu0 %v522_v36 }
 0x15d   : > { %520 = vmax.xlane.f32.xlu2 %v519_v37 }
 0x1b8   : > { %v1410_v38 = vpop.xlane.xlu2 %502 }
 0x1b9   : > { %vm533_vm13 = vcmp.eq.f32.partialorder %v477_v25, %v1410_v38 }
 0x1ba   : > { %v541_v39 = vsel %vm533_vm13, -inf, %v477_v25 }
 0x1bb   : > { %v549_v40 = vsel %vm262_vm0, %v541_v39, -inf }
 0x1bc   : > { %550 = vmax.xlane.f32.xlu1 %v549_v40 }
 0x1bd   : > { %v1414_v41 = vpop.xlane.xlu0 %514 }
 0x1be   : > { %vm537_vm14 = vcmp.eq.f32.partialorder %v489_v27, %v1414_v41 }
 0x1bf   : > { %v545_v43 = vsel %vm537_vm14, -inf, %v489_v27  ;;  %vm653_vm14 = vcmask 1041409  }
 0x1c0   : > { %v1417_v42 = vpop.xlane.xlu1 %508  ;;  %v561_v44 = vsel %vm262_vm0, %v545_v43, -inf }
 0x1c1   : > { %vm535_vm15 = vcmp.eq.f32.partialorder %v483_v29, %v1417_v42  ;;  %562 = vmax.xlane.f32.xlu2 %v561_v44 }
 0x1c2   : > { %v543_v45 = vsel %vm535_vm15, -inf, %v483_v29  ;;  %vm655_vm15 = vcmask 1042434  }
 0x1c3   : > { %v555_v46 = vsel %vm262_vm0, %v543_v45, -inf }
 0x1c4   : > { %556 = vmax.xlane.f32.xlu0 %v555_v46 }
 0x1c6   : > { %v1422_v47 = vpop.xlane.xlu0 %505 }
 0x1c7   : > { %vm534_vm1 = vcmp.eq.f32.partialorder %v480_v6, %v1422_v47 }
 0x1c8   : > { %v1424_v48 = vpop.xlane.xlu1 %517  ;;  %v1426_v49 = vpop.xlane.xlu2 %511  ;;  %v542_v50 = vsel %vm534_vm1, -inf, %v480_v6  ;;  %vm657_vm1 = vcmask 1043459  }
 0x1c9   : > { %vm538_vm2 = vcmp.eq.f32.partialorder %v492_v30, %v1424_v48  ;;  %vm536_vm3 = vcmp.eq.f32.partialorder %v486_v32, %v1426_v49  ;;  %v552_v53 = vsel %vm262_vm0, %v542_v50, -inf }
 0x1ca   : > { %v544_v51 = vsel %vm536_vm3, -inf, %v486_v32  ;;  %v546_v52 = vsel %vm538_vm2, -inf, %v492_v30  ;;  %553 = vmax.xlane.f32.xlu2 %v552_v53  ;;  %vm660_vm2 = vcmask 125952   ;;  %vm664_vm3 = vcmask 3072  }
 0x1cb   : > { %v558_v54 = vsel %vm262_vm0, %v544_v51, -inf  ;;  %v564_v55 = vsel %vm262_vm0, %v546_v52, -inf }
 0x1cc   : > { %559 = vmax.xlane.f32.xlu1 %v558_v54  ;;  %565 = vmax.xlane.f32.xlu0 %v564_v55 }
 0x1ce   : > { %v1434_v56 = vpop.xlane.xlu0 %523 }
 0x1cf   : > { %vm540_vm4 = vcmp.eq.f32.partialorder %v498_v35, %v1434_v56 }
 0x1d0   : > { %v1436_v57 = vpop.xlane.xlu2 %520  ;;  %v548_v58 = vsel %vm540_vm4, -inf, %v498_v35 }
 0x1d1   : > { %vm539_vm5 = vcmp.eq.f32.partialorder %v495_v19, %v1436_v57  ;;  %v570_v2 = vsel %vm262_vm0, %v548_v58, -inf }
 0x1d2   : > { %v547_v59 = vsel %vm539_vm5, -inf, %v495_v19  ;;  %571 = vmax.xlane.f32.xlu2 %v570_v2  ;;  %v638_v19 = vand.u32 127, %v637_v28 }
 0x1d3   : > { %v567_v1 = vsel %vm262_vm0, %v547_v59, -inf }
 0x1d4   : > { %568 = vmax.xlane.f32.xlu1 %v567_v1  ;;  %v640_v34 = vadd.s32 4294967288, %v638_v19 }
 0x22f   : > { %v551_v60 = vpop.xlane.xlu1 %550 }
 0x230   : > { %vm581_vm6 = vcmp.eq.f32.partialorder %v541_v39, %v551_v60  ;;  %v573_v29 = vadd.f32 %v551_v60, %v1410_v38 }
 0x231   : > { %v589_v61 = vsel %vm581_vm6, -inf, %v541_v39 }
 0x232   : > { %v597_v62 = vsel %vm262_vm0, %v589_v61, -inf }
 0x233   : > { %598 = vmax.xlane.f32.xlu0 %v597_v62 }
 0x234   : > { %v563_v3 = vpop.xlane.xlu2 %562 }
 0x235   : > { %vm585_vm7 = vcmp.eq.f32.partialorder %v545_v43, %v563_v3  ;;  %v577_v6 = vadd.f32 %v563_v3, %v1414_v41 }
 0x236   : > { %v593_v63 = vsel %vm585_vm7, -inf, %v545_v43 }
 0x237   : > { %v557_v4 = vpop.xlane.xlu0 %556  ;;  %v609_v5 = vsel %vm262_vm0, %v593_v63, -inf }
 0x238   : > { %vm583_vm8 = vcmp.eq.f32.partialorder %v543_v45, %v557_v4  ;;  %610 = vmax.xlane.f32.xlu1 %v609_v5  ;;  %v575_v18 = vadd.f32 %v557_v4, %v1417_v42 }
 0x239   : > { %v591_v8 = vsel %vm583_vm8, -inf, %v543_v45 }
 0x23a   : > { %v603_v9 = vsel %vm262_vm0, %v591_v8, -inf }
 0x23b   : > { %604 = vmax.xlane.f32.xlu2 %v603_v9 }
 0x23d   : > { %v554_v13 = vpop.xlane.xlu2 %553 }
 0x23e   : > { %vm582_vm9 = vcmp.eq.f32.partialorder %v542_v50, %v554_v13  ;;  %v574_v30 = vadd.f32 %v554_v13, %v1422_v47 }
 0x23f   : > { %v560_v14 = vpop.xlane.xlu1 %559  ;;  %v566_v15 = vpop.xlane.xlu0 %565  ;;  %v590_v17 = vsel %vm582_vm9, -inf, %v542_v50 }
 0x240   : > { %vm584_vm10 = vcmp.eq.f32.partialorder %v544_v51, %v560_v14  ;;  %vm586_vm11 = vcmp.eq.f32.partialorder %v546_v52, %v566_v15  ;;  %v600_v7 = vsel %vm262_vm0, %v590_v17, -inf  ;;  %v576_v31 = vadd.f32 %v560_v14, %v1426_v49 }
 0x241   : > { %v592_v16 = vsel %vm584_vm10, -inf, %v544_v51  ;;  %v594_v20 = vsel %vm586_vm11, -inf, %v546_v52  ;;  %601 = vmax.xlane.f32.xlu1 %v600_v7  ;;  %v578_v35 = vadd.f32 %v566_v15, %v1424_v48 }
 0x242   : > { %v606_v10 = vsel %vm262_vm0, %v592_v16, -inf  ;;  %v612_v11 = vsel %vm262_vm0, %v594_v20, -inf }
 0x243   : > { %607 = vmax.xlane.f32.xlu0 %v606_v10  ;;  %613 = vmax.xlane.f32.xlu2 %v612_v11 }
 0x245   : > { %v572_v0 = vpop.xlane.xlu2 %571 }
 0x246   : > { %vm588_vm12 = vcmp.eq.f32.partialorder %v548_v58, %v572_v0  ;;  %v580_v54 = vadd.f32 %v572_v0, %v1434_v56 }
 0x247   : > { %v569_v21 = vpop.xlane.xlu1 %568  ;;  %v596_v22 = vsel %vm588_vm12, -inf, %v548_v58 }
 0x248   : > { %vm587_vm13 = vcmp.eq.f32.partialorder %v547_v59, %v569_v21  ;;  %v618_v24 = vsel %vm262_vm0, %v596_v22, -inf  ;;  %v579_v53 = vadd.f32 %v569_v21, %v1436_v57 }
 0x249   : > { %v595_v23 = vsel %vm587_vm13, -inf, %v547_v59  ;;  %619 = vmax.xlane.f32.xlu1 %v618_v24 }
 0x24a   : > { %v615_v12 = vsel %vm262_vm0, %v595_v23, -inf  ;;  %vm642_vm0 = vcmask 130112  }
 0x24b   : > { %616 = vmax.xlane.f32.xlu0 %v615_v12 }
 0x2a6   : > { %v599_v25 = vpop.xlane.xlu0 %598 }
 0x2a7   : > { %v621_v32 = vadd.f32 %v599_v25, %v573_v29 }
 0x2a9   : > { %v639_v44 = vperm.slane %v621_v32, %v638_v19 }
 0x2ab   : > { %v611_v26 = vpop.xlane.xlu1 %610 }
 0x2ac   : > { %v625_v36 = vadd.f32 %v611_v26, %v577_v6 }
 0x2ae   : > { %v605_v27 = vpop.xlane.xlu2 %604  ;;  %v647_v47 = vperm.slane %v625_v36, %v638_v19 }
 0x2af   : > { %v623_v33 = vadd.f32 %v605_v27, %v575_v18 }
 0x2b1   : > { %v644_v41 = vperm.slane %v623_v33, %v638_v19 }
 0x2b4   : > { %v602_v37 = vpop.xlane.xlu1 %601 }
 0x2b5   : > { %v622_v40 = vadd.f32 %v602_v37, %v574_v30 }
 0x2b6   : > { %v608_v39 = vpop.xlane.xlu0 %607  ;;  %v614_v43 = vpop.xlane.xlu2 %613 }
 0x2b7   : > { %v624_v38 = vadd.f32 %v608_v39, %v576_v31  ;;  %v626_v42 = vadd.f32 %v614_v43, %v578_v35  ;;  %v641_v45 = vperm.slane %v622_v40, %v640_v34 }
 0x2b9   : > { %v645_v46 = vperm.slane %v624_v38, %v640_v34  ;;  %v648_v49 = vperm.slane %v626_v42, %v640_v34  ;;  %v643_v50 = vsel %vm642_vm0, %v641_v45, %v639_v44 }
 0x2bb   : > { %v646_v48 = vsel %vm642_vm0, %v645_v46, %v644_v41  ;;  %v649_v51 = vsel %vm642_vm0, %v648_v49, %v647_v47 }
 0x2bc   : > { %v654_v52 = vsel %vm653_vm14, %v646_v48, %v643_v50  ;;  %v620_v58 = vpop.xlane.xlu1 %619 }
 0x2bd   : > { %v656_v55 = vsel %vm655_vm15, %v649_v51, %v654_v52  ;;  %v628_v2 = vadd.f32 %v620_v58, %v580_v54 }
 0x2be   : > { %v617_v59 = vpop.xlane.xlu0 %616 }
 0x2bf   : > { %v627_v1 = vadd.f32 %v617_v59, %v579_v53  ;;  %v651_v60 = vperm.slane %v628_v2, %v640_v34 }
 0x2c1   : > { %v650_v61 = vperm.slane %v627_v1, %v638_v19 }
 0x2c3   : > { %v652_v62 = vsel %vm642_vm0, %v651_v60, %v650_v61 }
 0x2c4   : > { %v658_v3 = vsel %vm657_vm1, %v652_v62, %v656_v55 }
 0x2c5   : > { %v661_v4 = vsel %vm660_vm2, %v658_v3, 0.0 }
 0x2c6   : > { %662 = vadd.xlane.f32.xlu2 %v661_v4 }
 0x339   : > { %v663_v56 = vpop.xlane.xlu2 %662 }
 0x33a   : > { %665 = vst.msk [vmem:[%s246_s5] sm:$0xf] %vm664_vm3, %v663_v56 }
 0x33b PF: > { %s18_s19 = sadd.s32 1, %s1098_s19   ;;  %s1526_s15 = sld [smem:[#allocation11_spill]] }
 0x33c   : > { %p15_p6 = scmp.ge.s32.totalorder %s18_s19, 6   ;;  %s1527_s17 = sld [smem:[#allocation12_spill]] }
 0x33d   : > { %s1528_s9 = smov %s1062_s10  ;;  %s1529_s10 = smov %s1066_s11 }
 0x33e   : > { %s1530_s11 = smov %s1244_s23  ;;  %s1531_s12 = smov %s1074_s13 }
 0x33f   : > { %s1532_s13 = smov %s1078_s14  ;;  %s1533_s14 = smov %s1241_s7 }
 0x340   : > { %s1534_s16 = smov %s1094_s18  ;;  %s1535_s18 = smov %s1541_s21 }
 0x341   :  { %17 = sbr.rel (!%p15_p6) target bundleno = 12 (0xc), region = 85 }
 0x346   :  { %694 = vsyncpa [#allocation4], 1 }
 0x347   :  { %696 = vsyncpa [#allocation4 + $0x1], 1 }
 0x348   :  { %697 = vsyncpa [#allocation6], 1 }
 0x349   :  { %699 = vsyncpa [#allocation6 + $0x1], 1 }

</bundles_post_ra>
